<compile_context>
chip_gen: v6e
topology: v6e:2x2x1
jax: 0.10.0
libtpu: 0.0.40
codegen_flags: <defaults>
</compile_context>

<pallas_src>
import functools

import jax
import jax.numpy as jnp
from jax.experimental import pallas as pl
from jax.experimental.pallas import tpu as pltpu

_VMEM_LIMIT_BYTES = 48 * 1024 * 1024   # raised scoped-VMEM limit; < v7x 64 MiB physical
_VMEM_BUDGET_BYTES = 24 * 1024 * 1024  # working-set budget used for auto tile sizing
_MAX_ROW_TILE = 1024                   # diminishing returns past ~512-1024 rows


def _round_up(x, m):
    return (x + m - 1) // m * m


def _auto_row_tile(n, c):
    # Per-row VMEM bytes: 2 inputs x 2 pipeline buffers x C x 4B, ~6 f32
    # [row_tile, C] compute temporaries, plus the lane-padded (row_tile, 1)
    # f32 output block (double-buffered).
    bytes_per_row = (2 * 2 + 6) * c * 4 + 2 * 128 * 4
    tile = _VMEM_BUDGET_BYTES // bytes_per_row
    tile = min(tile, _MAX_ROW_TILE, _round_up(n, 8))
    return max(8, (tile // 8) * 8)


def _kd_loss_kernel(pred_ref, tgt_ref, out_ref, *,
                    inv_t, n_rows, row_tile, tiles_per_part):
    i = pl.program_id(0)      # parallel split (megacore / v7x 2 TC)
    j = pl.program_id(1)      # sequential reduction over row tiles

    @pl.when(j == 0)
    def _():
        out_ref[...] = jnp.zeros_like(out_ref)

    p = pred_ref[...].astype(jnp.float32) * inv_t   # scaled pred logits   [tile, C]
    t = tgt_ref[...].astype(jnp.float32) * inv_t    # scaled target logits [tile, C]

    p_sh = p - jnp.max(p, axis=1, keepdims=True)
    t_sh = t - jnp.max(t, axis=1, keepdims=True)

    p_lse = jnp.log(jnp.sum(jnp.exp(p_sh), axis=1, keepdims=True))   # [tile, 1]
    t_exp = jnp.exp(t_sh)                                            # [tile, C]
    t_sum = jnp.sum(t_exp, axis=1, keepdims=True)                    # [tile, 1]

    # KL per row with the softmax divide hoisted out of the class dimension:
    #   row_kl = (1/t_sum) * sum_c t_exp * (t_sh - p_sh) + (p_lse - log(t_sum))
    s = jnp.sum(t_exp * (t_sh - p_sh), axis=1, keepdims=True)        # [tile, 1]
    row_kl = s * pl.reciprocal(t_sum, approx=False) + (p_lse - jnp.log(t_sum))

    # Mask rows past the logical end of the batch (partial tail tile and any
    # duplicated clamped tiles when blocks do not split evenly across parts).
    tile_idx = i * tiles_per_part + j
    local = jax.lax.broadcasted_iota(jnp.int32, (row_tile, 1), 0)
    valid = (tile_idx * row_tile + local) < n_rows
    out_ref[...] += jnp.where(valid, row_kl, jnp.float32(0.0))


def kd_loss(pred, target, temperature=3.0, *, row_tile=None, num_parallel=2):
    """Pallas TPU implementation of KDLoss.forward. Returns a scalar float32."""
    assert pred.shape == target.shape and pred.ndim == 2
    n, c = pred.shape

    if row_tile is None:
        row_tile = _auto_row_tile(n, c)
    row_tile = max(8, (int(row_tile) // 8) * 8)

    num_blocks = pl.cdiv(n, row_tile)
    num_parallel = max(1, min(int(num_parallel), num_blocks))
    tiles_per_part = pl.cdiv(num_blocks, num_parallel)

    kernel = functools.partial(
        _kd_loss_kernel,
        inv_t=float(1.0 / temperature),
        n_rows=n,
        row_tile=row_tile,
        tiles_per_part=tiles_per_part,
    )

    if num_parallel * tiles_per_part == num_blocks:
        in_map = lambda i, j: (i * tiles_per_part + j, 0)
    else:  # uneven split: clamp to the last valid block; extra rows are masked
        in_map = lambda i, j: (jnp.minimum(i * tiles_per_part + j, num_blocks - 1), 0)

    cost = pl.CostEstimate(
        flops=12 * n * c,
        transcendentals=2 * n * c,
        bytes_accessed=2 * n * c * 4 + num_parallel * row_tile * 4,
    )

    partials = pl.pallas_call(
        kernel,
        out_shape=jax.ShapeDtypeStruct((num_parallel * row_tile, 1), jnp.float32),
        grid_spec=pltpu.PrefetchScalarGridSpec(
            num_scalar_prefetch=0,
            grid=(num_parallel, tiles_per_part),
            in_specs=[
                pl.BlockSpec((row_tile, c), in_map),
                pl.BlockSpec((row_tile, c), in_map),
            ],
            out_specs=pl.BlockSpec((row_tile, 1), lambda i, j: (i, 0)),
        ),
        compiler_params=pltpu.CompilerParams(
            dimension_semantics=("parallel", "arbitrary"),
            vmem_limit_bytes=_VMEM_LIMIT_BYTES,
        ),
        cost_estimate=cost,
    )(pred, target)

    scale = jnp.float32(float(temperature) * float(temperature) / n)
    return jnp.sum(partials) * scale


def kd_loss_ref(pred, target, temperature=3.0):
    """Plain-JAX reference matching torch.nn.KLDivLoss(reduction='batchmean')."""
    p = pred.astype(jnp.float32) / temperature
    t = target.astype(jnp.float32) / temperature
    log_p = jax.nn.log_softmax(p, axis=1)
    q = jax.nn.softmax(t, axis=1)
    log_q = jax.nn.log_softmax(t, axis=1)
    kl = jnp.sum(q * (log_q - log_p)) / pred.shape[0]
    return kl * temperature * temperature


if __name__ == "__main__":
    key = jax.random.PRNGKey(0)
    k1, k2, k3, k4 = jax.random.split(key, 4)

    # Case 1: small, non-multiple-of-8 batch -> single tile + tail masking.
    n1, c1 = 100, 128
    pred1 = jax.random.normal(k1, (n1, c1), dtype=jnp.float32)
    tgt1 = jax.random.normal(k2, (n1, c1), dtype=jnp.float32)
    loss1 = jax.block_until_ready(kd_loss(pred1, tgt1, temperature=3.0))
    ref1 = kd_loss_ref(pred1, tgt1, temperature=3.0)
    assert jnp.allclose(loss1, ref1, rtol=5e-5, atol=1e-6), (loss1, ref1)

    # Case 2: explicit small row tile -> 2-way parallel split, multi-step
    # reduction per part, partial last tile.
    n2, c2 = 1000, 256
    pred2 = jax.random.normal(k3, (n2, c2), dtype=jnp.float32)
    tgt2 = jax.random.normal(k4, (n2, c2), dtype=jnp.float32)
    loss2 = jax.block_until_ready(kd_loss(pred2, tgt2, temperature=3.0, row_tile=128))
    ref2 = kd_loss_ref(pred2, tgt2, temperature=3.0)
    assert jnp.allclose(loss2, ref2, rtol=5e-5, atol=1e-6), (loss2, ref2)

    print("KERNEL_OK")
</pallas_src>

<mosaic_0001>
module attributes {stable_mosaic.version = 11 : i64} {
  func.func @_kd_loss_kernel(%arg0: i32, %arg1: i32, %arg2: memref<104x128xf32, #tpu.memory_space<vmem>>, %arg3: memref<104x128xf32, #tpu.memory_space<vmem>>, %arg4: memref<104x1xf32, #tpu.memory_space<vmem>>) attributes {dimension_semantics = [#tpu.dimension_semantics<parallel>, #tpu.dimension_semantics<arbitrary>], iteration_bounds = array<i64: 1, 1>, scalar_prefetch = 0 : i64, scratch_operands = 0 : i64, tpu.core_type = #tpu.core_type<tc>, window_params = [{transform_indices = @transform_0, window_bounds = array<i64: 104, 128>}, {transform_indices = @transform_1, window_bounds = array<i64: 104, 128>}, {transform_indices = @transform_2, window_bounds = array<i64: 104, 1>}]} {
    %c0_i32 = arith.constant 0 : i32
    %0 = arith.cmpi eq, %arg1, %c0_i32 : i32
    %1 = arith.extui %0 : i1 to i32
    %c0_i32_0 = arith.constant 0 : i32
    %2 = arith.cmpi ne, %1, %c0_i32_0 : i32
    scf.if %2 {
      %cst_15 = arith.constant 0.000000e+00 : f32
      %46 = vector.broadcast %cst_15 : f32 to vector<104x1xf32>
      %c0_16 = arith.constant 0 : index
      %c0_17 = arith.constant 0 : index
      %47 = vector.load %arg4[%c0_16, %c0_17] : memref<104x1xf32, #tpu.memory_space<vmem>>, vector<104x1xf32>
      tpu.vector_store %arg4[%c0_16, %c0_17], %46 {strides = array<i32>} : memref<104x1xf32, #tpu.memory_space<vmem>>, vector<104x1xf32>,
    } else {
    }
    %c0 = arith.constant 0 : index
    %c0_1 = arith.constant 0 : index
    %3 = vector.load %arg2[%c0, %c0_1] : memref<104x128xf32, #tpu.memory_space<vmem>>, vector<104x128xf32>
    %cst = arith.constant 0.333333343 : f32
    %4 = vector.broadcast %cst : f32 to vector<104x128xf32>
    %5 = arith.mulf %3, %4 : vector<104x128xf32>
    %c0_2 = arith.constant 0 : index
    %c0_3 = arith.constant 0 : index
    %6 = vector.load %arg3[%c0_2, %c0_3] : memref<104x128xf32, #tpu.memory_space<vmem>>, vector<104x128xf32>
    %cst_4 = arith.constant 0.333333343 : f32
    %7 = vector.broadcast %cst_4 : f32 to vector<104x128xf32>
    %8 = arith.mulf %6, %7 : vector<104x128xf32>
    %cst_5 = arith.constant dense<0xFF800000> : vector<104xf32>
    %9 = vector.multi_reduction <maximumf>, %5, %cst_5 [1] : vector<104x128xf32> to vector<104xf32>
    %10 = vector.shape_cast %9 : vector<104xf32> to vector<104x1xf32>
    %11 = vector.broadcast %10 : vector<104x1xf32> to vector<104x128xf32>
    %12 = arith.subf %5, %11 : vector<104x128xf32>
    %cst_6 = arith.constant dense<0xFF800000> : vector<104xf32>
    %13 = vector.multi_reduction <maximumf>, %8, %cst_6 [1] : vector<104x128xf32> to vector<104xf32>
    %14 = vector.shape_cast %13 : vector<104xf32> to vector<104x1xf32>
    %15 = vector.broadcast %14 : vector<104x1xf32> to vector<104x128xf32>
    %16 = arith.subf %8, %15 : vector<104x128xf32>
    %17 = math.exp %12 : vector<104x128xf32>
    %cst_7 = arith.constant dense<0.000000e+00> : vector<104xf32>
    %18 = vector.multi_reduction <add>, %17, %cst_7 [1] : vector<104x128xf32> to vector<104xf32>
    %19 = vector.shape_cast %18 : vector<104xf32> to vector<104x1xf32>
    %20 = math.log %19 : vector<104x1xf32>
    %21 = math.exp %16 : vector<104x128xf32>
    %cst_8 = arith.constant dense<0.000000e+00> : vector<104xf32>
    %22 = vector.multi_reduction <add>, %21, %cst_8 [1] : vector<104x128xf32> to vector<104xf32>
    %23 = vector.shape_cast %22 : vector<104xf32> to vector<104x1xf32>
    %24 = arith.subf %16, %12 : vector<104x128xf32>
    %25 = arith.mulf %21, %24 : vector<104x128xf32>
    %cst_9 = arith.constant dense<0.000000e+00> : vector<104xf32>
    %26 = vector.multi_reduction <add>, %25, %cst_9 [1] : vector<104x128xf32> to vector<104xf32>
    %27 = vector.shape_cast %26 : vector<104xf32> to vector<104x1xf32>
    %28 = tpu.reciprocal %23 : vector<104x1xf32> -> vector<104x1xf32>
    %29 = arith.mulf %27, %28 : vector<104x1xf32>
    %30 = math.log %23 : vector<104x1xf32>
    %31 = arith.subf %20, %30 : vector<104x1xf32>
    %32 = arith.addf %29, %31 : vector<104x1xf32>
    %c1_i32 = arith.constant 1 : i32
    %33 = arith.muli %arg0, %c1_i32 : i32
    %34 = arith.addi %33, %arg1 : i32
    %35 = tpu.iota {dimensions = array<i32: 0>} : vector<104x1xi32>
    %c104_i32 = arith.constant 104 : i32
    %36 = arith.muli %34, %c104_i32 : i32
    %37 = vector.broadcast %36 : i32 to vector<104x1xi32>
    %38 = arith.addi %37, %35 : vector<104x1xi32>
    %c100_i32 = arith.constant 100 : i32
    %39 = vector.broadcast %c100_i32 : i32 to vector<104x1xi32>
    %40 = arith.cmpi slt, %38, %39 : vector<104x1xi32>
    %c0_10 = arith.constant 0 : index
    %c0_11 = arith.constant 0 : index
    %41 = vector.load %arg4[%c0_10, %c0_11] : memref<104x1xf32, #tpu.memory_space<vmem>>, vector<104x1xf32>
    %cst_12 = arith.constant 0.000000e+00 : f32
    %42 = vector.broadcast %cst_12 : f32 to vector<104x1xf32>
    %43 = arith.select %40, %32, %42 : vector<104x1xi1>, vector<104x1xf32>
    %44 = arith.addf %41, %43 : vector<104x1xf32>
    %c0_13 = arith.constant 0 : index
    %c0_14 = arith.constant 0 : index
    %45 = vector.load %arg4[%c0_13, %c0_14] : memref<104x1xf32, #tpu.memory_space<vmem>>, vector<104x1xf32>
    tpu.vector_store %arg4[%c0_13, %c0_14], %44 {strides = array<i32>} : memref<104x1xf32, #tpu.memory_space<vmem>>, vector<104x1xf32>,
    return
  }
  func.func @transform_0(%arg0: i32, %arg1: i32) -> (i32, i32) {
    %c1_i32 = arith.constant 1 : i32
    %0 = arith.muli %arg0, %c1_i32 : i32
    %1 = arith.addi %0, %arg1 : i32
    %c0_i32 = arith.constant 0 : i32
    %c0_i32_0 = arith.constant 0 : i32
    return %1, %c0_i32 : i32, i32
  }
  func.func @transform_1(%arg0: i32, %arg1: i32) -> (i32, i32) {
    %c1_i32 = arith.constant 1 : i32
    %0 = arith.muli %arg0, %c1_i32 : i32
    %1 = arith.addi %0, %arg1 : i32
    %c0_i32 = arith.constant 0 : i32
    %c0_i32_0 = arith.constant 0 : i32
    return %1, %c0_i32 : i32, i32
  }
  func.func @transform_2(%arg0: i32, %arg1: i32) -> (i32, i32) {
    %c0_i32 = arith.constant 0 : i32
    %c0_i32_0 = arith.constant 0 : i32
    return %arg0, %c0_i32 : i32, i32
  }
}

</mosaic_0001>

<bundles_post_ra>
// kernel: tpu_custom_call.1
= control target key start
LH: loop header
LB: loop body
LE: loop exit
PB: predicated region body
PF: predicated region fallthrough
CT: control target
= control target key end

     0   :  { %7 = vsyncpa [#allocation3], 0  ;;  %s1152_s0 = inlined_call_operand.hbm [shape: f32[100,128], index: 0, kind: input, shape index: {}]   ;;  %s1153_s1 = inlined_call_operand.hbm [shape: f32[100,128], index: 1, kind: input, shape index: {}]   ;;  %s1154_s2 = inlined_call_operand.vmem [shape: f32[104,1], index: 2, kind: output, shape index: {}]  }
   0x1   :  { %8 = vsyncpa [#allocation5], 0  ;;  %s740_s9 = smov [#allocation2]  }
   0x2   :  { %s18_s10 = sshll.u32 %s740_s9, 4  ;;  %s19_s10 = int_to_ptr.vmem [resolvable:$true] %s18_s10 }
   0x3   :  { %s704_s11 = scalar_lea.vmem %s19_s10, 1664  ;;  %p709_p1 = scmp.lt.s32.totalorder %s19_s10, %s19_s10 }
   0x4   :  { %p705_p0 = scmp.ne.s32.totalorder %s19_s10, %s704_s11  ;;  %p710_p2 = scmp.lt.s32.totalorder %s704_s11, %s704_s11 }
   0x6   :  { %p711_p3 = por %p710_p2, %p709_p1 }
   0x8   :  { %p712_p4 = pnand %p711_p3, %p705_p0 }
   0xa   :  { %715 = shalt.err (!%p712_p4)
}
   0xb   :  { %s741_s12 = smov 128   ;;  %s742_s13 = smov 8  }
   0xc   :  { %24 = dma.hbm_to_vmem [thread:$0]  %s1152_s0, 1664, %s19_s10, [#allocation3], %s741_s12, %s741_s12, %s742_s13  }
   0xd   :  { %s743_s16 = smov [#allocation4]  }
   0xe   :  { %s34_s17 = sshll.u32 %s743_s16, 4  ;;  %s35_s17 = int_to_ptr.vmem [resolvable:$true] %s34_s17 }
   0xf   :  { %s724_s18 = scalar_lea.vmem %s35_s17, 1664  ;;  %p729_p6 = scmp.lt.s32.totalorder %s35_s17, %s35_s17 }
  0x10   :  { %p725_p5 = scmp.ne.s32.totalorder %s35_s17, %s724_s18  ;;  %p730_p7 = scmp.lt.s32.totalorder %s724_s18, %s724_s18 }
  0x12   :  { %p731_p8 = por %p730_p7, %p729_p6 }
  0x14   :  { %p732_p9 = pnand %p731_p8, %p725_p5 }
  0x16   :  { %735 = shalt.err (!%p732_p9)
}
  0x17   :  { %40 = dma.hbm_to_vmem [thread:$0]  %s1153_s1, 1664, %s35_s17, [#allocation5], %s741_s12, %s741_s12, %s742_s13  }
  0x18   :  { %736 = dma.done.wait [#allocation3], 1664  }
  0x19   :  { %737 = vsyncadd [#allocation3], 4294965632 }
  0x1a   :  { %738 = dma.done.wait [#allocation5], 1664  }
  0x1b   :  { %739 = vsyncadd [#allocation5], 4294965632  ;;  %v81_v0 = vld [vmem:[#allocation2 + $0x60] sm:$0xff]  ;;  %v107_v2 = vld [vmem:[#allocation4 + $0x60] sm:$0xff]  ;;  %vm55_vm0 = vcmask 7168  }
  0x1c   :  { %v69_v1 = vld [vmem:[#allocation2] sm:$0xff]  ;;  %v766_v3 = vmul.f32 0.33333334, %v81_v0  ;;  %v70_v5 = vld [vmem:[#allocation2 + $0x8] sm:$0xff]  ;;  %v772_v6 = vmul.f32 0.33333334, %v107_v2 }
  0x1d   :  { %v768_v4 = vmul.f32 0.33333334, %v69_v1  ;;  %v774_v7 = vmul.f32 0.33333334, %v70_v5  ;;  %v71_v8 = vld [vmem:[#allocation2 + $0x10] sm:$0xff]  ;;  %v72_v9 = vld [vmem:[#allocation2 + $0x18] sm:$0xff] }
  0x1e   :  { %145 = vmax.xlane.f32.xlu0 %v766_v3  ;;  %v778_v10 = vmul.f32 0.33333334, %v71_v8  ;;  %v780_v11 = vmul.f32 0.33333334, %v72_v9  ;;  %v73_v12 = vld [vmem:[#allocation2 + $0x20] sm:$0xff]  ;;  %v74_v13 = vld [vmem:[#allocation2 + $0x28] sm:$0xff] }
  0x1f   :  { %121 = vmax.xlane.f32.xlu1 %v768_v4  ;;  %v784_v14 = vmul.f32 0.33333334, %v73_v12  ;;  %v786_v15 = vmul.f32 0.33333334, %v74_v13  ;;  %v75_v16 = vld [vmem:[#allocation2 + $0x30] sm:$0xff]  ;;  %v76_v17 = vld [vmem:[#allocation2 + $0x38] sm:$0xff] }
  0x20   :  { %v790_v18 = vmul.f32 0.33333334, %v75_v16  ;;  %v792_v19 = vmul.f32 0.33333334, %v76_v17  ;;  %v77_v20 = vld [vmem:[#allocation2 + $0x40] sm:$0xff]  ;;  %v78_v21 = vld [vmem:[#allocation2 + $0x48] sm:$0xff] }
  0x21   :  { %v796_v22 = vmul.f32 0.33333334, %v77_v20  ;;  %v798_v23 = vmul.f32 0.33333334, %v78_v21  ;;  %v79_v24 = vld [vmem:[#allocation2 + $0x50] sm:$0xff]  ;;  %v80_v25 = vld [vmem:[#allocation2 + $0x58] sm:$0xff] }
  0x22   :  { %184 = vmax.xlane.f32.xlu0 %v772_v6  ;;  %v802_v26 = vmul.f32 0.33333334, %v79_v24  ;;  %v804_v27 = vmul.f32 0.33333334, %v80_v25  ;;  %v95_v28 = vld [vmem:[#allocation4] sm:$0xff]  ;;  %v96_v29 = vld [vmem:[#allocation4 + $0x8] sm:$0xff] }
  0x23   :  { %123 = vmax.xlane.f32.xlu1 %v774_v7  ;;  %v808_v30 = vmul.f32 0.33333334, %v95_v28  ;;  %v810_v31 = vmul.f32 0.33333334, %v96_v29  ;;  %v97_v32 = vld [vmem:[#allocation4 + $0x10] sm:$0xff]  ;;  %v98_v33 = vld [vmem:[#allocation4 + $0x18] sm:$0xff] }
  0x24   :  { %v814_v34 = vmul.f32 0.33333334, %v97_v32  ;;  %v816_v35 = vmul.f32 0.33333334, %v98_v33  ;;  %v99_v36 = vld [vmem:[#allocation4 + $0x20] sm:$0xff]  ;;  %v100_v37 = vld [vmem:[#allocation4 + $0x28] sm:$0xff] }
  0x25   :  { %v820_v38 = vmul.f32 0.33333334, %v99_v36  ;;  %v822_v39 = vmul.f32 0.33333334, %v100_v37  ;;  %v101_v40 = vld [vmem:[#allocation4 + $0x30] sm:$0xff]  ;;  %v102_v41 = vld [vmem:[#allocation4 + $0x38] sm:$0xff] }
  0x26   :  { %125 = vmax.xlane.f32.xlu0 %v778_v10  ;;  %v826_v42 = vmul.f32 0.33333334, %v101_v40  ;;  %v828_v43 = vmul.f32 0.33333334, %v102_v41  ;;  %v103_v44 = vld [vmem:[#allocation4 + $0x40] sm:$0xff]  ;;  %v104_v45 = vld [vmem:[#allocation4 + $0x48] sm:$0xff] }
  0x27   :  { %127 = vmax.xlane.f32.xlu1 %v780_v11  ;;  %v832_v46 = vmul.f32 0.33333334, %v103_v44  ;;  %v834_v47 = vmul.f32 0.33333334, %v104_v45  ;;  %v105_v48 = vld [vmem:[#allocation4 + $0x50] sm:$0xff]  ;;  %v106_v49 = vld [vmem:[#allocation4 + $0x58] sm:$0xff] }
  0x28   :  { %v838_v50 = vmul.f32 0.33333334, %v105_v48  ;;  %v840_v51 = vmul.f32 0.33333334, %v106_v49 }
  0x2a   :  { %129 = vmax.xlane.f32.xlu0 %v784_v14 }
  0x2b   :  { %131 = vmax.xlane.f32.xlu1 %v786_v15 }
  0x2e   :  { %133 = vmax.xlane.f32.xlu0 %v790_v18 }
  0x2f   :  { %135 = vmax.xlane.f32.xlu1 %v792_v19 }
  0x32   :  { %137 = vmax.xlane.f32.xlu0 %v796_v22 }
  0x33   :  { %139 = vmax.xlane.f32.xlu1 %v798_v23 }
  0x36   :  { %141 = vmax.xlane.f32.xlu0 %v802_v26 }
  0x37   :  { %143 = vmax.xlane.f32.xlu1 %v804_v27 }
  0x3a   :  { %160 = vmax.xlane.f32.xlu0 %v808_v30 }
  0x3b   :  { %162 = vmax.xlane.f32.xlu1 %v810_v31 }
  0x3e   :  { %164 = vmax.xlane.f32.xlu0 %v814_v34 }
  0x3f   :  { %166 = vmax.xlane.f32.xlu1 %v816_v35 }
  0x42   :  { %168 = vmax.xlane.f32.xlu0 %v820_v38 }
  0x43   :  { %170 = vmax.xlane.f32.xlu1 %v822_v39 }
  0x46   :  { %172 = vmax.xlane.f32.xlu0 %v826_v42 }
  0x47   :  { %174 = vmax.xlane.f32.xlu1 %v828_v43 }
  0x4a   :  { %176 = vmax.xlane.f32.xlu0 %v832_v46 }
  0x4b   :  { %178 = vmax.xlane.f32.xlu1 %v834_v47 }
  0x4e   :  { %180 = vmax.xlane.f32.xlu0 %v838_v50 }
  0x4f   :  { %182 = vmax.xlane.f32.xlu1 %v840_v51 }
  0xa7   :  { %v146_v52 = vpop.xlane.xlu0 %145 }
  0xa8   :  { %v122_v53 = vpop.xlane.xlu1 %121  ;;  %v845_v54 = vsub.f32 %v766_v3, %v146_v52 }
  0xa9   :  { %v848_v55 = vsub.f32 %v768_v4, %v122_v53 }
  0xaa   :  { %v223_v56 = vmul.f32 1.442695, %v845_v54 }
  0xab   :  { %v199_v57 = vmul.f32 1.442695, %v848_v55  ;;  %v185_v58 = vpop.xlane.xlu0 %184 }
  0xac   :  { %v124_v59 = vpop.xlane.xlu1 %123  ;;  %566 = vpow2.f32 %v223_v56  ;;  %v853_v60 = vsub.f32 %v772_v6, %v185_v58 }
  0xad   :  { %v856_v61 = vsub.f32 %v774_v7, %v124_v59  ;;  %568 = vpow2.f32 %v199_v57 }
  0xae   :  { %v301_v62 = vmul.f32 1.442695, %v853_v60 }
  0xaf   :  { %v201_v63 = vmul.f32 1.442695, %v856_v61  ;;  %v126_v0 = vpop.xlane.xlu0 %125 }
  0xb0   :  { %v128_v1 = vpop.xlane.xlu1 %127  ;;  %570 = vpow2.f32 %v301_v62  ;;  %v861_v2 = vsub.f32 %v778_v10, %v126_v0 }
  0xb1   :  { %v864_v3 = vsub.f32 %v780_v11, %v128_v1  ;;  %572 = vpow2.f32 %v201_v63 }
  0xb2   :  { %v203_v4 = vmul.f32 1.442695, %v861_v2 }
  0xb3   :  { %v205_v5 = vmul.f32 1.442695, %v864_v3  ;;  %v130_v6 = vpop.xlane.xlu0 %129 }
  0xb4   :  { %v132_v7 = vpop.xlane.xlu1 %131  ;;  %574 = vpow2.f32 %v203_v4  ;;  %v869_v8 = vsub.f32 %v784_v14, %v130_v6 }
  0xb5   :  { %v872_v9 = vsub.f32 %v786_v15, %v132_v7  ;;  %576 = vpow2.f32 %v205_v5 }
  0xb6   :  { %v207_v10 = vmul.f32 1.442695, %v869_v8 }
  0xb7   :  { %v209_v11 = vmul.f32 1.442695, %v872_v9  ;;  %v134_v12 = vpop.xlane.xlu0 %133 }
  0xb8   :  { %v136_v13 = vpop.xlane.xlu1 %135  ;;  %578 = vpow2.f32 %v207_v10  ;;  %v877_v16 = vsub.f32 %v790_v18, %v134_v12 }
  0xb9   :  { %v880_v17 = vsub.f32 %v792_v19, %v136_v13  ;;  %v567_v20 = vpop.eup %566  ;;  %580 = vpow2.f32 %v209_v11 }
  0xba   :  { %v211_v14 = vmul.f32 1.442695, %v877_v16  ;;  %249 = vadd.xlane.f32.xlu0 %v567_v20  ;;  %v569_v21 = vpop.eup %568 }
  0xbb   :  { %v213_v15 = vmul.f32 1.442695, %v880_v17  ;;  %v138_v24 = vpop.xlane.xlu0 %137 }
  0xbc   :  { %v140_v25 = vpop.xlane.xlu1 %139  ;;  %582 = vpow2.f32 %v211_v14  ;;  %v885_v28 = vsub.f32 %v796_v22, %v138_v24 }
  0xbd   :  { %v888_v18 = vsub.f32 %v798_v23, %v140_v25  ;;  %v890_v29 = vpop.eup %570  ;;  %584 = vpow2.f32 %v213_v15 }
  0xbe   :  { %v215_v19 = vmul.f32 1.442695, %v885_v28  ;;  %327 = vadd.xlane.f32.xlu1 %v890_v29  ;;  %225 = vadd.xlane.f32.xlu0 %v569_v21  ;;  %v573_v33 = vpop.eup %572 }
  0xbf   :  { %v217_v32 = vmul.f32 1.442695, %v888_v18  ;;  %v142_v36 = vpop.xlane.xlu0 %141 }
  0xc0   :  { %v144_v37 = vpop.xlane.xlu1 %143  ;;  %586 = vpow2.f32 %v215_v19  ;;  %v896_v22 = vsub.f32 %v802_v26, %v142_v36 }
  0xc1   :  { %v899_v23 = vsub.f32 %v804_v27, %v144_v37  ;;  %v575_v40 = vpop.eup %574  ;;  %588 = vpow2.f32 %v217_v32 }
  0xc2   :  { %v219_v41 = vmul.f32 1.442695, %v896_v22  ;;  %229 = vadd.xlane.f32.xlu0 %v575_v40  ;;  %227 = vadd.xlane.f32.xlu1 %v573_v33  ;;  %v577_v45 = vpop.eup %576 }
  0xc3   :  { %v221_v44 = vmul.f32 1.442695, %v899_v23  ;;  %v161_v48 = vpop.xlane.xlu0 %160 }
  0xc4   :  { %v163_v49 = vpop.xlane.xlu1 %162  ;;  %590 = vpow2.f32 %v219_v41  ;;  %v904_v52 = vsub.f32 %v808_v30, %v161_v48 }
  0xc5   :  { %v907_v26 = vsub.f32 %v810_v31, %v163_v49  ;;  %v579_v27 = vpop.eup %578  ;;  %592 = vpow2.f32 %v221_v44 }
  0xc6   :  { %v277_v53 = vmul.f32 1.442695, %v904_v52  ;;  %233 = vadd.xlane.f32.xlu0 %v579_v27  ;;  %231 = vadd.xlane.f32.xlu1 %v577_v45  ;;  %v581_v56 = vpop.eup %580 }
  0xc7   :  { %v279_v57 = vmul.f32 1.442695, %v907_v26  ;;  %v165_v58 = vpop.xlane.xlu0 %164 }
  0xc8   :  { %v167_v59 = vpop.xlane.xlu1 %166  ;;  %594 = vpow2.f32 %v277_v53  ;;  %v912_v62 = vsub.f32 %v814_v34, %v165_v58  ;;  %v341_v58 = vsub.f32 %v853_v60, %v845_v54 }
  0xc9   :  { %v915_v30 = vsub.f32 %v816_v35, %v167_v59  ;;  %v583_v31 = vpop.eup %582  ;;  %596 = vpow2.f32 %v279_v57 }
  0xca   :  { %v281_v63 = vmul.f32 1.442695, %v912_v62  ;;  %237 = vadd.xlane.f32.xlu0 %v583_v31  ;;  %235 = vadd.xlane.f32.xlu1 %v581_v56  ;;  %v585_v0 = vpop.eup %584  ;;  %v354_v59 = vmul.f32 %v890_v29, %v341_v58 }
  0xcb   :  { %v283_v1 = vmul.f32 1.442695, %v915_v30  ;;  %v169_v4 = vpop.xlane.xlu0 %168  ;;  %v332_v54 = vsub.f32 %v915_v30, %v864_v3 }
  0xcc   :  { %v171_v5 = vpop.xlane.xlu1 %170  ;;  %598 = vpow2.f32 %v281_v63  ;;  %v920_v6 = vsub.f32 %v820_v38, %v169_v4  ;;  %v329_v63 = vsub.f32 %v904_v52, %v848_v55 }
  0xcd   :  { %v923_v34 = vsub.f32 %v822_v39, %v171_v5  ;;  %v587_v35 = vpop.eup %586  ;;  %600 = vpow2.f32 %v283_v1  ;;  %v331_v5 = vsub.f32 %v912_v62, %v861_v2 }
  0xce   :  { %v285_v7 = vmul.f32 1.442695, %v920_v6  ;;  %241 = vadd.xlane.f32.xlu0 %v587_v35  ;;  %239 = vadd.xlane.f32.xlu1 %v585_v0  ;;  %v589_v10 = vpop.eup %588  ;;  %v330_v0 = vsub.f32 %v907_v26, %v856_v61  ;;  %v333_v55 = vsub.f32 %v920_v6, %v869_v8  ;;  %v744_v35 = vmov 0.0  }
  0xcf   :  { %v287_v11 = vmul.f32 1.442695, %v923_v34  ;;  %v173_v12 = vpop.xlane.xlu0 %172  ;;  %v334_v61 = vsub.f32 %v923_v34, %v872_v9  ;;  %68 = vst.msk [vmem:[%s1154_s2 + $0x60] sm:$0xff] %vm55_vm0, %v744_v35  ;;  %56 = vst.msk [vmem:[%s1154_s2] sm:$0xff] %vm55_vm0, %v744_v35 }
  0xd0   :  { %v175_v13 = vpop.xlane.xlu1 %174  ;;  %602 = vpow2.f32 %v285_v7  ;;  %v928_v20 = vsub.f32 %v826_v42, %v173_v12  ;;  %57 = vst.msk [vmem:[%s1154_s2 + $0x8] sm:$0xff] %vm55_vm0, %v744_v35  ;;  %58 = vst.msk [vmem:[%s1154_s2 + $0x10] sm:$0xff] %vm55_vm0, %v744_v35 }
  0xd1   :  { %v931_v38 = vsub.f32 %v828_v43, %v175_v13  ;;  %v591_v39 = vpop.eup %590  ;;  %604 = vpow2.f32 %v287_v11  ;;  %59 = vst.msk [vmem:[%s1154_s2 + $0x18] sm:$0xff] %vm55_vm0, %v744_v35  ;;  %60 = vst.msk [vmem:[%s1154_s2 + $0x20] sm:$0xff] %vm55_vm0, %v744_v35 }
  0xd2   :  { %v289_v14 = vmul.f32 1.442695, %v928_v20  ;;  %245 = vadd.xlane.f32.xlu0 %v591_v39  ;;  %243 = vadd.xlane.f32.xlu1 %v589_v10  ;;  %v593_v15 = vpop.eup %592  ;;  %61 = vst.msk [vmem:[%s1154_s2 + $0x28] sm:$0xff] %vm55_vm0, %v744_v35  ;;  %62 = vst.msk [vmem:[%s1154_s2 + $0x30] sm:$0xff] %vm55_vm0, %v744_v35  ;;  %v335_v2 = vsub.f32 %v928_v20, %v877_v16 }
  0xd3   :  { %v291_v21 = vmul.f32 1.442695, %v931_v38  ;;  %v177_v24 = vpop.xlane.xlu0 %176  ;;  %63 = vst.msk [vmem:[%s1154_s2 + $0x38] sm:$0xff] %vm55_vm0, %v744_v35  ;;  %64 = vst.msk [vmem:[%s1154_s2 + $0x40] sm:$0xff] %vm55_vm0, %v744_v35  ;;  %v336_v3 = vsub.f32 %v931_v38, %v880_v17 }
  0xd4   :  { %v179_v25 = vpop.xlane.xlu1 %178  ;;  %606 = vpow2.f32 %v289_v14  ;;  %v936_v19 = vsub.f32 %v832_v46, %v177_v24  ;;  %65 = vst.msk [vmem:[%s1154_s2 + $0x48] sm:$0xff] %vm55_vm0, %v744_v35  ;;  %66 = vst.msk [vmem:[%s1154_s2 + $0x50] sm:$0xff] %vm55_vm0, %v744_v35 }
  0xd5   :  { %v939_v42 = vsub.f32 %v834_v47, %v179_v25  ;;  %v595_v43 = vpop.eup %594  ;;  %608 = vpow2.f32 %v291_v21  ;;  %67 = vst.msk [vmem:[%s1154_s2 + $0x58] sm:$0xff] %vm55_vm0, %v744_v35 }
  0xd6   :  { %v293_v32 = vmul.f32 1.442695, %v936_v19  ;;  %303 = vadd.xlane.f32.xlu0 %v595_v43  ;;  %247 = vadd.xlane.f32.xlu1 %v593_v15  ;;  %v597_v40 = vpop.eup %596  ;;  %v342_v4 = vmul.f32 %v595_v43, %v329_v63  ;;  %v337_v62 = vsub.f32 %v936_v19, %v885_v28 }
  0xd7   :  { %v295_v33 = vmul.f32 1.442695, %v939_v42  ;;  %v181_v36 = vpop.xlane.xlu0 %180  ;;  %v343_v1 = vmul.f32 %v597_v40, %v330_v0  ;;  %v338_v30 = vsub.f32 %v939_v42, %v888_v18 }
  0xd8   :  { %v183_v37 = vpop.xlane.xlu1 %182  ;;  %610 = vpow2.f32 %v293_v32  ;;  %v944_v41 = vsub.f32 %v838_v50, %v181_v36 }
  0xd9   :  { %v947_v46 = vsub.f32 %v840_v51, %v183_v37  ;;  %v599_v47 = vpop.eup %598  ;;  %612 = vpow2.f32 %v295_v33 }
  0xda   :  { %v297_v44 = vmul.f32 1.442695, %v944_v41  ;;  %307 = vadd.xlane.f32.xlu0 %v599_v47  ;;  %305 = vadd.xlane.f32.xlu1 %v597_v40  ;;  %v601_v45 = vpop.eup %600  ;;  %v344_v29 = vmul.f32 %v599_v47, %v331_v5  ;;  %v339_v16 = vsub.f32 %v944_v41, %v896_v22 }
  0xdb   :  { %v299_v48 = vmul.f32 1.442695, %v947_v46  ;;  %v345_v60 = vmul.f32 %v601_v45, %v332_v54  ;;  %v340_v17 = vsub.f32 %v947_v46, %v899_v23 }
  0xdc   :  { %614 = vpow2.f32 %v297_v44 }
  0xdd   :  { %v603_v49 = vpop.eup %602  ;;  %616 = vpow2.f32 %v299_v48 }
  0xde   :  { %311 = vadd.xlane.f32.xlu0 %v603_v49  ;;  %309 = vadd.xlane.f32.xlu1 %v601_v45  ;;  %v605_v27 = vpop.eup %604  ;;  %v346_v26 = vmul.f32 %v603_v49, %v333_v55  ;;  %v460_v49 = vlaneseq }
  0xdf   :  { %v347_v52 = vmul.f32 %v605_v27, %v334_v61 }
  0xe0   :  { %v461_v58 = vshrl.u32 %v460_v49, 7 }
  0xe1   :  { %v607_v50 = vpop.eup %606 }
  0xe2   :  { %315 = vadd.xlane.f32.xlu0 %v607_v50  ;;  %313 = vadd.xlane.f32.xlu1 %v605_v27  ;;  %v609_v51 = vpop.eup %608  ;;  %v348_v9 = vmul.f32 %v607_v50, %v335_v2  ;;  %v473_v54 = vadd.s32 96, %v461_v58 }
  0xe3   :  { %v349_v8 = vmul.f32 %v609_v51, %v336_v3 }
  0xe4   :  { %vm501_vm1 = vcmp.lt.s32.totalorder %v473_v54, 100 }
  0xe5   :  { %v611_v53 = vpop.eup %610 }
  0xe6   :  { %319 = vadd.xlane.f32.xlu0 %v611_v53  ;;  %317 = vadd.xlane.f32.xlu1 %v609_v51  ;;  %v613_v56 = vpop.eup %612  ;;  %v350_v34 = vmul.f32 %v611_v53, %v337_v62 }
  0xe7   :  { %v351_v6 = vmul.f32 %v613_v56, %v338_v30 }
  0xe9   :  { %v615_v57 = vpop.eup %614 }
  0xea   :  { %323 = vadd.xlane.f32.xlu0 %v615_v57  ;;  %321 = vadd.xlane.f32.xlu1 %v613_v56  ;;  %v617_v31 = vpop.eup %616  ;;  %v352_v7 = vmul.f32 %v615_v57, %v339_v16  ;;  %v514_v16 = vld [vmem:[%s1154_s2 + $0x60] sm:$0xff] }
  0xeb   :  { %v353_v10 = vmul.f32 %v617_v31, %v340_v17 }
  0xee   :  { %379 = vadd.xlane.f32.xlu0 %v354_v59  ;;  %325 = vadd.xlane.f32.xlu1 %v617_v31 }
  0xf2   :  { %357 = vadd.xlane.f32.xlu0 %v343_v1  ;;  %355 = vadd.xlane.f32.xlu1 %v342_v4 }
  0xf6   :  { %361 = vadd.xlane.f32.xlu0 %v345_v60  ;;  %359 = vadd.xlane.f32.xlu1 %v344_v29 }
  0xfa   :  { %365 = vadd.xlane.f32.xlu0 %v347_v52  ;;  %363 = vadd.xlane.f32.xlu1 %v346_v26 }
  0xfe   :  { %369 = vadd.xlane.f32.xlu0 %v349_v8  ;;  %367 = vadd.xlane.f32.xlu1 %v348_v9 }
 0x102   :  { %373 = vadd.xlane.f32.xlu0 %v351_v6  ;;  %371 = vadd.xlane.f32.xlu1 %v350_v34 }
 0x106   :  { %375 = vadd.xlane.f32.xlu1 %v352_v7  ;;  %377 = vadd.xlane.f32.xlu0 %v353_v10 }
 0x143   :  { %v250_v28 = vpop.xlane.xlu0 %249 }
 0x144   :  { %618 = vlog2.f32 %v250_v28 }
 0x147   :  { %v226_v11 = vpop.xlane.xlu0 %225  ;;  %v328_v12 = vpop.xlane.xlu1 %327 }
 0x148   :  { %620 = vlog2.f32 %v226_v11 }
 0x149   :  { %622 = vrcp.f32 %v328_v12 }
 0x14a   :  { %624 = vlog2.f32 %v328_v12 }
 0x14b   :  { %v230_v18 = vpop.xlane.xlu0 %229  ;;  %v228_v13 = vpop.xlane.xlu1 %227 }
 0x14c   :  { %626 = vlog2.f32 %v230_v18 }
 0x14d   :  { %628 = vlog2.f32 %v228_v13 }
 0x14f   :  { %v234_v20 = vpop.xlane.xlu0 %233  ;;  %v232_v38 = vpop.xlane.xlu1 %231 }
 0x150   :  { %630 = vlog2.f32 %v234_v20 }
 0x151   :  { %632 = vlog2.f32 %v232_v38  ;;  %v619_v43 = vpop.eup %618 }
 0x152   :  { %v276_v29 = vmul.f32 0.6931472, %v619_v43 }
 0x153   :  { %v238_v39 = vpop.xlane.xlu0 %237  ;;  %v236_v14 = vpop.xlane.xlu1 %235 }
 0x154   :  { %634 = vlog2.f32 %v238_v39 }
 0x155   :  { %636 = vlog2.f32 %v236_v14  ;;  %v621_v32 = vpop.eup %620 }
 0x156   :  { %v623_v37 = vpop.eup %622  ;;  %v252_v62 = vmul.f32 0.6931472, %v621_v32 }
 0x157   :  { %v242_v15 = vpop.xlane.xlu0 %241  ;;  %v240_v22 = vpop.xlane.xlu1 %239 }
 0x158   :  { %638 = vlog2.f32 %v242_v15  ;;  %v625_v40 = vpop.eup %624 }
 0x159   :  { %640 = vlog2.f32 %v240_v22  ;;  %v1030_v41 = vpop.eup %626  ;;  %v432_v4 = vmul.f32 0.6931472, %v625_v40 }
 0x15a   :  { %v629_v46 = vpop.eup %628  ;;  %v256_v15 = vmul.f32 0.6931472, %v1030_v41 }
 0x15b   :  { %v246_v23 = vpop.xlane.xlu0 %245  ;;  %v244_v21 = vpop.xlane.xlu1 %243  ;;  %v445_v8 = vsub.f32 %v276_v29, %v432_v4  ;;  %v254_v6 = vmul.f32 0.6931472, %v629_v46 }
 0x15c   :  { %642 = vlog2.f32 %v246_v23 }
 0x15d   :  { %644 = vlog2.f32 %v244_v21  ;;  %v1032_v45 = vpop.eup %630  ;;  %v503_v21 = vld [vmem:[%s1154_s2 + $0x8] sm:$0xff] }
 0x15e   :  { %v633_v48 = vpop.eup %632 }
 0x15f   :  { %v304_v24 = vpop.xlane.xlu0 %303  ;;  %v248_v25 = vpop.xlane.xlu1 %247  ;;  %v258_v22 = vmul.f32 0.6931472, %v633_v48 }
 0x160   :  { %646 = vlog2.f32 %v304_v24 }
 0x161   :  { %v1034_v27 = vpop.eup %634 }
 0x162   :  { %v1036_v50 = vpop.eup %636 }
 0x163   :  { %v308_v19 = vpop.xlane.xlu0 %307  ;;  %v306_v42 = vpop.xlane.xlu1 %305  ;;  %v262_v58 = vmul.f32 0.6931472, %v1036_v50 }
 0x164   :  { %648 = vlog2.f32 %v306_v42 }
 0x165   :  { %650 = vrcp.f32 %v304_v24  ;;  %v1038_v56 = vpop.eup %638  ;;  %v502_v24 = vld [vmem:[%s1154_s2] sm:$0xff] }
 0x166   :  { %652 = vlog2.f32 %v308_v19  ;;  %v1040_v57 = vpop.eup %640 }
 0x167   :  { %v312_v33 = vpop.xlane.xlu0 %311  ;;  %v310_v36 = vpop.xlane.xlu1 %309 }
 0x168   :  { %654 = vlog2.f32 %v310_v36 }
 0x169   :  { %656 = vlog2.f32 %v248_v25  ;;  %v1042_v59 = vpop.eup %642 }
 0x16a   :  { %658 = vrcp.f32 %v306_v42  ;;  %v1044_v31 = vpop.eup %644 }
 0x16b   :  { %v316_v47 = vpop.xlane.xlu0 %315  ;;  %v314_v44 = vpop.xlane.xlu1 %313  ;;  %660 = vlog2.f32 %v312_v33 }
 0x16c   :  { %662 = vlog2.f32 %v314_v44 }
 0x16d   :  { %664 = vrcp.f32 %v308_v19  ;;  %v647_v1 = vpop.eup %646 }
 0x16e   :  { %666 = vrcp.f32 %v310_v36  ;;  %v408_v61 = vmul.f32 0.6931472, %v647_v1  ;;  %v504_v1 = vld [vmem:[%s1154_s2 + $0x10] sm:$0xff] }
 0x16f   :  { %v320_v51 = vpop.xlane.xlu0 %319  ;;  %v318_v53 = vpop.xlane.xlu1 %317  ;;  %668 = vlog2.f32 %v316_v47 }
 0x170   :  { %670 = vlog2.f32 %v318_v53  ;;  %v433_v11 = vsub.f32 %v252_v62, %v408_v61  ;;  %v264_v62 = vmul.f32 0.6931472, %v1034_v27 }
 0x171   :  { %672 = vrcp.f32 %v312_v33  ;;  %v649_v5 = vpop.eup %648 }
 0x172   :  { %674 = vrcp.f32 %v314_v44  ;;  %v651_v60 = vpop.eup %650  ;;  %v410_v2 = vmul.f32 0.6931472, %v649_v5 }
 0x173   :  { %v1046_v63 = vpop.xlane.xlu0 %323  ;;  %v322_v0 = vpop.xlane.xlu1 %321  ;;  %676 = vlog2.f32 %v320_v51 }
 0x174   :  { %v653_v55 = vpop.eup %652  ;;  %678 = vlog2.f32 %v322_v0  ;;  %v434_v38 = vsub.f32 %v254_v6, %v410_v2  ;;  %v507_v6 = vld [vmem:[%s1154_s2 + $0x28] sm:$0xff] }
 0x175   :  { %v655_v35 = vpop.eup %654  ;;  %680 = vrcp.f32 %v316_v47  ;;  %v412_v7 = vmul.f32 0.6931472, %v653_v55 }
 0x176   :  { %v1048_v9 = vpop.eup %656  ;;  %682 = vrcp.f32 %v318_v53  ;;  %v414_v10 = vmul.f32 0.6931472, %v655_v35  ;;  %v260_v53 = vmul.f32 0.6931472, %v1032_v45 }
 0x177   :  { %v380_v52 = vpop.xlane.xlu0 %379  ;;  %v326_v26 = vpop.xlane.xlu1 %325  ;;  %684 = vlog2.f32 %v1046_v63  ;;  %v435_v40 = vsub.f32 %v256_v15, %v412_v7  ;;  %v268_v15 = vmul.f32 0.6931472, %v1038_v56 }
 0x178   :  { %v406_v3 = vmul.f32 %v623_v37, %v380_v52  ;;  %v659_v30 = vpop.eup %658  ;;  %686 = vlog2.f32 %v326_v26  ;;  %v436_v37 = vsub.f32 %v258_v22, %v414_v10  ;;  %v270_v22 = vmul.f32 0.6931472, %v1044_v31 }
 0x179   :  { %v661_v17 = vpop.eup %660  ;;  %688 = vrcp.f32 %v320_v51 }
 0x17a   :  { %v458_v34 = vadd.f32 %v445_v8, %v406_v3  ;;  %v663_v18 = vpop.eup %662  ;;  %690 = vrcp.f32 %v322_v0  ;;  %v416_v32 = vmul.f32 0.6931472, %v661_v17  ;;  %v505_v0 = vld [vmem:[%s1154_s2 + $0x18] sm:$0xff] }
 0x17b   :  { %v358_v28 = vpop.xlane.xlu0 %357  ;;  %v356_v12 = vpop.xlane.xlu1 %355  ;;  %v418_v33 = vmul.f32 0.6931472, %v663_v18  ;;  %692 = vrcp.f32 %v1046_v63 }
 0x17c   :  { %v527_v13 = vsel %vm501_vm1, %v458_v34, 0.0  ;;  %v395_v20 = vmul.f32 %v659_v30, %v358_v28  ;;  %v394_v39 = vmul.f32 %v651_v60, %v356_v12  ;;  %v665_v14 = vpop.eup %664  ;;  %694 = vrcp.f32 %v326_v26  ;;  %v506_v34 = vld [vmem:[%s1154_s2 + $0x20] sm:$0xff] }
 0x17d   :  { %v540_v23 = vadd.f32 %v527_v13, %v514_v16  ;;  %v667_v25 = vpop.eup %666  ;;  %v438_v29 = vsub.f32 %v262_v58, %v418_v33  ;;  %v437_v55 = vsub.f32 %v260_v53, %v416_v32  ;;  %v266_v30 = vmul.f32 0.6931472, %v1040_v57 }
 0x17e   :  { %v447_v19 = vadd.f32 %v434_v38, %v395_v20  ;;  %v446_v42 = vadd.f32 %v433_v11, %v394_v39  ;;  %v669_v43 = vpop.eup %668 }
 0x17f   :  { %554 = vst.msk [vmem:[%s1154_s2 + $0x60] sm:$0xff] %vm55_vm0, %v540_v23  ;;  %v362_v36 = vpop.xlane.xlu0 %361  ;;  %v360_v41 = vpop.xlane.xlu1 %359  ;;  %v420_v5 = vmul.f32 0.6931472, %v669_v43  ;;  %v509_v23 = vld [vmem:[%s1154_s2 + $0x38] sm:$0xff] }
 0x180   :  { %v671_v46 = vpop.eup %670  ;;  %v529_v47 = vadd.f32 %v503_v21, %v447_v19  ;;  %v528_v44 = vadd.f32 %v502_v24, %v446_v42  ;;  %v397_v48 = vmul.f32 %v667_v25, %v362_v36  ;;  %v396_v49 = vmul.f32 %v665_v14, %v360_v41  ;;  %v508_v21 = vld [vmem:[%s1154_s2 + $0x30] sm:$0xff] }
 0x181   :  { %v673_v51 = vpop.eup %672  ;;  %v422_v54 = vmul.f32 0.6931472, %v671_v46  ;;  %v439_v12 = vsub.f32 %v264_v62, %v420_v5 }
 0x182   :  { %v675_v4 = vpop.eup %674  ;;  %543 = vst.msk [vmem:[%s1154_s2 + $0x8] sm:$0xff] %vm55_vm0, %v529_v47  ;;  %542 = vst.msk [vmem:[%s1154_s2] sm:$0xff] %vm55_vm0, %v528_v44  ;;  %v449_v45 = vadd.f32 %v436_v37, %v397_v48  ;;  %v448_v50 = vadd.f32 %v435_v40, %v396_v49  ;;  %v272_v47 = vmul.f32 0.6931472, %v1042_v59  ;;  %v274_v44 = vmul.f32 0.6931472, %v1048_v9 }
 0x183   :  { %v677_v63 = vpop.eup %676  ;;  %v366_v60 = vpop.xlane.xlu0 %365  ;;  %v440_v11 = vsub.f32 %v266_v30, %v422_v54  ;;  %v511_v48 = vld [vmem:[%s1154_s2 + $0x48] sm:$0xff]  ;;  %v510_v49 = vld [vmem:[%s1154_s2 + $0x40] sm:$0xff]  ;;  %v513_v54 = vld [vmem:[%s1154_s2 + $0x58] sm:$0xff] }
 0x184   :  { %v364_v61 = vpop.xlane.xlu1 %363  ;;  %v679_v52 = vpop.eup %678  ;;  %v531_v26 = vadd.f32 %v505_v0, %v449_v45  ;;  %v530_v35 = vadd.f32 %v504_v1, %v448_v50  ;;  %v399_v2 = vmul.f32 %v675_v4, %v366_v60  ;;  %v424_v7 = vmul.f32 0.6931472, %v677_v63  ;;  %v512_v60 = vld [vmem:[%s1154_s2 + $0x50] sm:$0xff] }
 0x185   :  { %v398_v3 = vmul.f32 %v673_v51, %v364_v61  ;;  %v681_v8 = vpop.eup %680  ;;  %v426_v10 = vmul.f32 0.6931472, %v679_v52 }
 0x186   :  { %v683_v16 = vpop.eup %682  ;;  %545 = vst.msk [vmem:[%s1154_s2 + $0x18] sm:$0xff] %vm55_vm0, %v531_v26  ;;  %544 = vst.msk [vmem:[%s1154_s2 + $0x10] sm:$0xff] %vm55_vm0, %v530_v35  ;;  %v451_v27 = vadd.f32 %v438_v29, %v399_v2  ;;  %v441_v33 = vsub.f32 %v268_v15, %v424_v7 }
 0x187   :  { %v450_v57 = vadd.f32 %v437_v55, %v398_v3  ;;  %v685_v17 = vpop.eup %684  ;;  %v370_v28 = vpop.xlane.xlu0 %369  ;;  %v442_v32 = vsub.f32 %v270_v22, %v426_v10 }
 0x188   :  { %v368_v18 = vpop.xlane.xlu1 %367  ;;  %v687_v13 = vpop.eup %686  ;;  %v533_v20 = vadd.f32 %v507_v6, %v451_v27  ;;  %v401_v39 = vmul.f32 %v683_v16, %v370_v28  ;;  %v428_v19 = vmul.f32 0.6931472, %v685_v17 }
 0x189   :  { %v532_v38 = vadd.f32 %v506_v34, %v450_v57  ;;  %v400_v14 = vmul.f32 %v681_v8, %v368_v18  ;;  %v689_v24 = vpop.eup %688  ;;  %v430_v42 = vmul.f32 0.6931472, %v687_v13 }
 0x18a   :  { %547 = vst.msk [vmem:[%s1154_s2 + $0x28] sm:$0xff] %vm55_vm0, %v533_v20  ;;  %v453_v56 = vadd.f32 %v440_v11, %v401_v39  ;;  %v691_v25 = vpop.eup %690  ;;  %v443_v1 = vsub.f32 %v272_v47, %v428_v19 }
 0x18b   :  { %546 = vst.msk [vmem:[%s1154_s2 + $0x20] sm:$0xff] %vm55_vm0, %v532_v38  ;;  %v452_v31 = vadd.f32 %v439_v12, %v400_v14  ;;  %v374_v43 = vpop.xlane.xlu0 %373  ;;  %v693_v51 = vpop.eup %692  ;;  %v444_v0 = vsub.f32 %v274_v44, %v430_v42 }
 0x18c   :  { %v372_v36 = vpop.xlane.xlu1 %371  ;;  %v535_v37 = vadd.f32 %v509_v23, %v453_v56  ;;  %v403_v41 = vmul.f32 %v691_v25, %v374_v43  ;;  %v695_v53 = vpop.eup %694 }
 0x18d   :  { %v534_v40 = vadd.f32 %v508_v21, %v452_v31  ;;  %v402_v46 = vmul.f32 %v689_v24, %v372_v36 }
 0x18e   :  { %549 = vst.msk [vmem:[%s1154_s2 + $0x38] sm:$0xff] %vm55_vm0, %v535_v37  ;;  %v455_v59 = vadd.f32 %v442_v32, %v403_v41 }
 0x18f   :  { %548 = vst.msk [vmem:[%s1154_s2 + $0x30] sm:$0xff] %vm55_vm0, %v534_v40  ;;  %v454_v9 = vadd.f32 %v441_v33, %v402_v46  ;;  %v378_v58 = vpop.xlane.xlu0 %377 }
 0x190   :  { %v376_v4 = vpop.xlane.xlu1 %375  ;;  %v537_v45 = vadd.f32 %v511_v48, %v455_v59  ;;  %v405_v63 = vmul.f32 %v695_v53, %v378_v58 }
 0x191   :  { %v536_v50 = vadd.f32 %v510_v49, %v454_v9  ;;  %v404_v5 = vmul.f32 %v693_v51, %v376_v4 }
 0x192   :  { %551 = vst.msk [vmem:[%s1154_s2 + $0x48] sm:$0xff] %vm55_vm0, %v537_v45  ;;  %v457_v29 = vadd.f32 %v444_v0, %v405_v63 }
 0x193   :  { %550 = vst.msk [vmem:[%s1154_s2 + $0x40] sm:$0xff] %vm55_vm0, %v536_v50  ;;  %v456_v55 = vadd.f32 %v443_v1, %v404_v5 }
 0x194   :  { %v539_v61 = vadd.f32 %v513_v54, %v457_v29 }
 0x195   :  { %v538_v52 = vadd.f32 %v512_v60, %v456_v55 }
 0x196   :  { %553 = vst.msk [vmem:[%s1154_s2 + $0x58] sm:$0xff] %vm55_vm0, %v539_v61 }
 0x197   :  { %552 = vst.msk [vmem:[%s1154_s2 + $0x50] sm:$0xff] %vm55_vm0, %v538_v52 }
 0x198   :  { %559 = vsyncpa [#allocation3], 1 }
 0x199   :  { %560 = vsyncpa [#allocation5], 1 }

</bundles_post_ra>
